<compile_context>
chip_gen: v5e
topology: v5e:2x2
jax: 0.10.0
libtpu: 0.0.40
codegen_flags: <defaults>
</compile_context>

<pallas_src>
import functools

import jax
import jax.numpy as jnp
from jax.experimental import pallas as pl
from jax.experimental.pallas import tpu as pltpu


def _round_up(x, m):
    return ((x + m - 1) // m) * m


def _choose_tile_n(out_dim, tile_n_req):
    """Pick a lane-dense tile width (multiple of 128) for the out_dim stream.

    Prefers (in order): largest width <= request that divides the 128-padded
    out_dim with an EVEN tile count (v7x 2-TC split, no extra padding), then
    any even tile count, then the requested width.
    """
    out_dim_128 = _round_up(out_dim, 128)
    n128 = out_dim_128 // 128
    req = min(max(_round_up(max(tile_n_req, 128), 128) // 128, 1), n128)
    best = req
    if n128 >= 2:
        exact_even = [t for t in range(req, 0, -1)
                      if n128 % t == 0 and (n128 // t) % 2 == 0]
        any_even = [t for t in range(req, 0, -1)
                    if (-(-n128 // t)) % 2 == 0]
        if exact_even:
            best = exact_even[0]
        elif any_even:
            best = any_even[0]
    tile_n = best * 128
    out_dim_pad = _round_up(out_dim_128, tile_n)
    return tile_n, out_dim_pad


def _mlp_kernel(x_ref, w1_ref, b1_ref, w2_ref, b2_ref, o_ref):
    # x:  (B_pad, K) bf16      w1: (K, H) bf16        b1: (1, H) f32
    # w2: (H, TILE_N) bf16     b2: (1, TILE_N) f32    o:  (B_pad, TILE_N) f32
    #
    # The first (tiny) matmul is recomputed per N tile: x/w1/b1 use constant
    # index maps so they stay VMEM-resident (no re-DMA); recomputation keeps the
    # N grid axis embarrassingly parallel (safe for megacore splitting on v7x)
    # and is free filler under the w2-DMA-bound regime.
    h = jnp.dot(x_ref[...], w1_ref[...], preferred_element_type=jnp.float32)
    h = jnp.maximum(h + b1_ref[...], 0.0)                       # bias + ReLU in f32
    y = jnp.dot(h.astype(w2_ref.dtype), w2_ref[...],
                preferred_element_type=jnp.float32)
    o_ref[...] = jnp.tanh(y + b2_ref[...])                      # bias + Tanh in f32


@functools.partial(jax.jit, static_argnames=("output_shape",))
def _forward(flat_features, w1, b1, w2_tiles, b2, *, output_shape):
    # Concat fused into the same jit as the pallas_call (no separate HBM round trip).
    combined = jnp.concatenate(flat_features, axis=-1).astype(jnp.bfloat16)
    B, input_dim = combined.shape

    # Pad batch to full sublanes (8) -> no masked stores, clean MXU M packing.
    B_pad = _round_up(B, 8)
    if B_pad != B:
        combined = jnp.pad(combined, ((0, B_pad - B), (0, 0)))

    hidden = w1.shape[1]
    grid_n, _, tile_n = w2_tiles.shape
    out_dim_pad = grid_n * tile_n

    # Advisory cost estimate (includes the per-tile recompute of matmul 1).
    flops = 2 * B_pad * hidden * (input_dim * grid_n + out_dim_pad)
    bytes_accessed = (combined.size * 2 + w1.size * 2 + w2_tiles.size * 2
                      + b1.size * 4 + b2.size * 4 + B_pad * out_dim_pad * 4)

    # Deeper buffering on the dominant w2 stream only pays off with a longer grid.
    w2_depth = 3 if grid_n >= 3 else 2
    w2_spec_kwargs = {}
    if w2_depth == 3:
        w2_spec_kwargs["pipeline_mode"] = pl.Buffered(3)

    # VMEM: resident x/w1/b1 + multi-buffered w2 tile + double-buffered b2/out tiles.
    vmem_bytes = (combined.size * 2 + w1.size * 2 + b1.size * 4
                  + w2_depth * hidden * tile_n * 2      # w2 tile buffers, bf16
                  + 2 * tile_n * 4                       # b2 tile, double-buffered
                  + 2 * B_pad * tile_n * 4)              # out tile, double-buffered
    vmem_limit = int(min(max(vmem_bytes + vmem_bytes // 2 + (2 << 20), 16 << 20),
                         48 << 20))

    out = pl.pallas_call(
        _mlp_kernel,
        out_shape=jax.ShapeDtypeStruct((B_pad, out_dim_pad), jnp.float32),
        grid_spec=pltpu.PrefetchScalarGridSpec(
            num_scalar_prefetch=0,
            grid=(grid_n,),
            in_specs=[
                pl.BlockSpec((B_pad, input_dim), lambda n: (0, 0)),       # resident
                pl.BlockSpec((input_dim, hidden), lambda n: (0, 0)),      # resident
                pl.BlockSpec((1, hidden), lambda n: (0, 0)),              # resident
                # Pre-tiled, contiguous w2 stream: one contiguous DMA per step.
                pl.BlockSpec((None, hidden, tile_n), lambda n: (n, 0, 0),
                             **w2_spec_kwargs),
                pl.BlockSpec((1, tile_n), lambda n: (0, n)),              # streamed
            ],
            out_specs=pl.BlockSpec((B_pad, tile_n), lambda n: (0, n)),
        ),
        compiler_params=pltpu.CompilerParams(
            dimension_semantics=("parallel",),
            vmem_limit_bytes=vmem_limit,
        ),
        cost_estimate=pl.CostEstimate(
            flops=flops,
            transcendentals=B_pad * out_dim_pad,
            bytes_accessed=bytes_accessed,
        ),
    )(combined, w1, b1, w2_tiles, b2)

    c, h, w = output_shape
    out_dim = c * h * w
    return out[:B, :out_dim].reshape(B, c, h, w)


class FontGeneratorPallas:
    HIDDEN = 512

    def __init__(self, feature_dim, output_shape, num_experts, key, tile_n=2048):
        self.feature_dim = feature_dim
        self.num_experts = num_experts
        self.output_shape = tuple(output_shape)

        c, h, w = self.output_shape
        out_dim = c * h * w
        input_dim = feature_dim * 2 * num_experts
        hidden = self.HIDDEN

        # Lane-dense tiling of the output / w2 stream; prefers an even grid (v7x).
        tile_n, out_dim_pad = _choose_tile_n(out_dim, tile_n)
        grid_n = out_dim_pad // tile_n
        self.tile_n = tile_n
        self.out_dim = out_dim

        k1, k2, k3, k4 = jax.random.split(key, 4)
        # Deterministic synthetic params (shapes match nn.Linear weights, stored transposed).
        s1 = 1.0 / jnp.sqrt(jnp.float32(input_dim))
        s2 = 1.0 / jnp.sqrt(jnp.float32(hidden))
        w1 = jax.random.uniform(k1, (input_dim, hidden), jnp.float32, -s1, s1)
        b1 = jax.random.uniform(k2, (1, hidden), jnp.float32, -s1, s1)
        w2 = jax.random.uniform(k3, (hidden, out_dim), jnp.float32, -s2, s2)
        b2 = jax.random.uniform(k4, (1, out_dim), jnp.float32, -s2, s2)

        # Weight-streaming bound -> bf16 matmul weights (f32 accumulation in-kernel).
        self.w1 = w1.astype(jnp.bfloat16)
        self.b1 = b1
        # Pad, then pre-tile w2 into a contiguous (grid_n, hidden, tile_n) layout so
        # each grid step's dominant DMA is one fully contiguous transfer.
        w2_pad = jnp.pad(w2, ((0, 0), (0, out_dim_pad - out_dim)))
        self.w2 = jnp.transpose(
            w2_pad.reshape(hidden, grid_n, tile_n), (1, 0, 2)).astype(jnp.bfloat16)
        self.b2 = jnp.pad(b2, ((0, 0), (0, out_dim_pad - out_dim)))

    def __call__(self, features):
        # features: list of (fs, fc) pairs, each (B, feature_dim)
        flat = tuple(t for pair in features for t in pair)
        return _forward(flat, self.w1, self.b1, self.w2, self.b2,
                        output_shape=self.output_shape)


def _reference(model, features):
    # Pure-JAX reference using the same bf16 weights / bf16 matmul inputs as the kernel.
    combined = jnp.concatenate(
        [jnp.concatenate([fs, fc], axis=-1) for fs, fc in features], axis=-1
    ).astype(jnp.bfloat16)
    hidden = model.w1.shape[1]
    # Un-tile w2 back to (hidden, out_dim_pad) for the dense reference.
    w2_2d = jnp.transpose(model.w2, (1, 0, 2)).reshape(hidden, -1)
    h = jnp.dot(combined, model.w1, preferred_element_type=jnp.float32)
    h = jnp.maximum(h + model.b1, 0.0)
    y = jnp.dot(h.astype(jnp.bfloat16), w2_2d, preferred_element_type=jnp.float32)
    y = jnp.tanh(y + model.b2)
    c, hh, ww = model.output_shape
    return y[:, :model.out_dim].reshape(combined.shape[0], c, hh, ww)


if __name__ == "__main__":
    key = jax.random.PRNGKey(0)
    k_param, k_data = jax.random.split(key)

    # Small shapes consistent with the module.
    batch = 2
    feature_dim = 32
    num_experts = 2
    output_shape = (1, 16, 16)   # (c, h, w) -> out_dim = 256

    # tile_n=128 so the small test still exercises the N-tiled grid (grid=(2,)),
    # the pre-tiled contiguous w2 layout, and the batch padding path.
    model = FontGeneratorPallas(feature_dim, output_shape, num_experts, k_param,
                                tile_n=128)

    # features: list of num_experts (fs, fc) pairs
    data_keys = jax.random.split(k_data, 2 * num_experts)
    features = [
        (
            jax.random.normal(data_keys[2 * e], (batch, feature_dim), jnp.float32),
            jax.random.normal(data_keys[2 * e + 1], (batch, feature_dim), jnp.float32),
        )
        for e in range(num_experts)
    ]

    out = model(features)
    out = jax.block_until_ready(out)

    ref = _reference(model, features)
    assert out.shape == (batch, *output_shape), out.shape
    assert jnp.allclose(out, ref, atol=1e-2, rtol=1e-2), (
        float(jnp.max(jnp.abs(out - ref))))

    print("KERNEL_OK")
</pallas_src>

<mosaic_0001>
module attributes {stable_mosaic.version = 11 : i64} {
  func.func @_mlp_kernel(%arg0: i32, %arg1: memref<8x128xbf16, #tpu.memory_space<vmem>>, %arg2: memref<128x512xbf16, #tpu.memory_space<vmem>>, %arg3: memref<1x512xf32, #tpu.memory_space<vmem>>, %arg4: memref<1x512x128xbf16, #tpu.memory_space<vmem>>, %arg5: memref<1x128xf32, #tpu.memory_space<vmem>>, %arg6: memref<8x128xf32, #tpu.memory_space<vmem>>) attributes {dimension_semantics = [#tpu.dimension_semantics<parallel>], iteration_bounds = array<i64: 2>, scalar_prefetch = 0 : i64, scratch_operands = 0 : i64, tpu.core_type = #tpu.core_type<tc>, window_params = [{pipeline_mode = #tpu.pipeline_mode<synchronous>, transform_indices = @transform_0, window_bounds = array<i64: 8, 128>}, {pipeline_mode = #tpu.pipeline_mode<synchronous>, transform_indices = @transform_1, window_bounds = array<i64: 128, 512>}, {pipeline_mode = #tpu.pipeline_mode<synchronous>, transform_indices = @transform_2, window_bounds = array<i64: 1, 512>}, {transform_indices = @transform_3, window_bounds = array<i64: 1, 512, 128>}, {transform_indices = @transform_4, window_bounds = array<i64: 1, 128>}, {transform_indices = @transform_5, window_bounds = array<i64: 8, 128>}]} {
    %c0 = arith.constant 0 : index
    %c0_0 = arith.constant 0 : index
    %0 = vector.load %arg1[%c0, %c0_0] : memref<8x128xbf16, #tpu.memory_space<vmem>>, vector<8x128xbf16>
    %c0_1 = arith.constant 0 : index
    %c0_2 = arith.constant 0 : index
    %1 = vector.load %arg2[%c0_1, %c0_2] : memref<128x512xbf16, #tpu.memory_space<vmem>>, vector<128x512xbf16>
    %cst = arith.constant dense<0.000000e+00> : vector<8x512xf32>
    %2 = tpu.matmul %0, %1, %cst {dimension_numbers = #tpu.dot_dimension_numbers<[1], [0], [0], [1], [0, 0, 1, 1], [], []>} : vector<8x128xbf16>, vector<128x512xbf16>, vector<8x512xf32> -> vector<8x512xf32>
    %c0_3 = arith.constant 0 : index
    %c0_4 = arith.constant 0 : index
    %3 = vector.load %arg3[%c0_3, %c0_4] : memref<1x512xf32, #tpu.memory_space<vmem>>, vector<1x512xf32>
    %4 = vector.broadcast %3 : vector<1x512xf32> to vector<8x512xf32>
    %5 = arith.addf %2, %4 : vector<8x512xf32>
    %cst_5 = arith.constant 0.000000e+00 : f32
    %6 = vector.broadcast %cst_5 : f32 to vector<8x512xf32>
    %7 = arith.maximumf %5, %6 : vector<8x512xf32>
    %8 = arith.truncf %7 : vector<8x512xf32> to vector<8x512xbf16>
    %c0_6 = arith.constant 0 : index
    %c0_7 = arith.constant 0 : index
    %c0_8 = arith.constant 0 : index
    %9 = vector.load %arg4[%c0_6, %c0_7, %c0_8] : memref<1x512x128xbf16, #tpu.memory_space<vmem>>, vector<1x512x128xbf16>
    %10 = vector.shape_cast %9 : vector<1x512x128xbf16> to vector<512x128xbf16>
    %cst_9 = arith.constant dense<0.000000e+00> : vector<8x128xf32>
    %11 = tpu.matmul %8, %10, %cst_9 {dimension_numbers = #tpu.dot_dimension_numbers<[1], [0], [0], [1], [0, 0, 1, 1], [], []>} : vector<8x512xbf16>, vector<512x128xbf16>, vector<8x128xf32> -> vector<8x128xf32>
    %c0_10 = arith.constant 0 : index
    %c0_11 = arith.constant 0 : index
    %12 = vector.load %arg5[%c0_10, %c0_11] : memref<1x128xf32, #tpu.memory_space<vmem>>, vector<1x128xf32>
    %13 = vector.broadcast %12 : vector<1x128xf32> to vector<8x128xf32>
    %14 = arith.addf %11, %13 : vector<8x128xf32>
    %15 = math.tanh %14 : vector<8x128xf32>
    %c0_12 = arith.constant 0 : index
    %c0_13 = arith.constant 0 : index
    %16 = vector.load %arg6[%c0_12, %c0_13] : memref<8x128xf32, #tpu.memory_space<vmem>>, vector<8x128xf32>
    tpu.vector_store %arg6[%c0_12, %c0_13], %15 {strides = array<i32>} : memref<8x128xf32, #tpu.memory_space<vmem>>, vector<8x128xf32>,
    return
  }
  func.func @transform_0(%arg0: i32) -> (i32, i32) {
    %c0_i32 = arith.constant 0 : i32
    %c0_i32_0 = arith.constant 0 : i32
    %c0_i32_1 = arith.constant 0 : i32
    return %c0_i32, %c0_i32_0 : i32, i32
  }
  func.func @transform_1(%arg0: i32) -> (i32, i32) {
    %c0_i32 = arith.constant 0 : i32
    %c0_i32_0 = arith.constant 0 : i32
    %c0_i32_1 = arith.constant 0 : i32
    return %c0_i32, %c0_i32_0 : i32, i32
  }
  func.func @transform_2(%arg0: i32) -> (i32, i32) {
    %c0_i32 = arith.constant 0 : i32
    %c0_i32_0 = arith.constant 0 : i32
    %c0_i32_1 = arith.constant 0 : i32
    return %c0_i32, %c0_i32_0 : i32, i32
  }
  func.func @transform_3(%arg0: i32) -> (i32, i32, i32) {
    %c0_i32 = arith.constant 0 : i32
    %c0_i32_0 = arith.constant 0 : i32
    %c0_i32_1 = arith.constant 0 : i32
    return %arg0, %c0_i32, %c0_i32_0 : i32, i32, i32
  }
  func.func @transform_4(%arg0: i32) -> (i32, i32) {
    %c0_i32 = arith.constant 0 : i32
    %c0_i32_0 = arith.constant 0 : i32
    return %c0_i32, %arg0 : i32, i32
  }
  func.func @transform_5(%arg0: i32) -> (i32, i32) {
    %c0_i32 = arith.constant 0 : i32
    %c0_i32_0 = arith.constant 0 : i32
    return %c0_i32, %arg0 : i32, i32
  }
}

</mosaic_0001>

<bundles_post_ra>
// kernel: _forward.1
= control target key start
LH: loop header
LB: loop body
LE: loop exit
PB: predicated region body
PF: predicated region fallthrough
CT: control target
= control target key end

     0   :  { %10 = vsyncpa [#allocation3], 0  ;;  %s1620_s0 = inlined_call_operand.vmem [shape: bf16[8,128], index: 0, kind: input, shape index: {}]   ;;  %s1621_s1 = inlined_call_operand.hbm [shape: bf16[128,512], index: 1, kind: input, shape index: {}]   ;;  %s1622_s2 = inlined_call_operand.vmem [shape: f32[1,512], index: 2, kind: input, shape index: {}]   ;;  %s1623_s3 = inlined_call_operand.hbm [shape: bf16[2,512,128], index: 3, kind: input, shape index: {}]   ;;  %s1624_s4 = inlined_call_operand.vmem [shape: f32[1,256], index: 4, kind: input, shape index: {}]   ;;  %s1625_s5 = inlined_call_operand.vmem [shape: f32[8,256], index: 5, kind: output, shape index: {}]  }
   0x1   :  { %11 = vsyncpa [#allocation5], 0 }
   0x2   :  { %13 = vsyncpa [#allocation5 + $0x1], 0  ;;  %s1465_s18 = smov 0   ;;  %s1467_s19 = smov 0  }
   0x3   :  { %s1469_s20 = smov 0   ;;  %s1471_s21 = smov 0  }
   0x4 LB: > { %s1484_s22 = sadd.s32 4294967295, %s1428_s21   ;;  %p102_p0 = scmp.ne.s32.totalorder %s1420_s19, %s1416_s18  ;;  %s1428_s21 = sphi %s1471_s21, %s1632_s21   ;;  %s1424_s20 = sphi %s1469_s20, %s1631_s20   ;;  %s1420_s19 = sphi %s1467_s19, %s1630_s19   ;;  %s1416_s18 = sphi %s1465_s18, %s1629_s18  }
   0x5   : > { %p103_p1 = scmp.eq.s32.totalorder %s1484_s22, 0  ;;  %p940_p2 = scmp.ge.s32.totalorder %s1428_s21, 1 }
   0x6   : > { %p165_p3 = scmp.lt.s32.totalorder %s1428_s21, 3  ;;  %s179_s26 = sshll.u32 %s1621_s1, 4  ;;  %s180_s26 = int_to_ptr.hbm [resolvable:$true] %s179_s26 }
   0x7   : > { %p1492_p4 = por %p103_p1, %p102_p0  ;;  %s1430_s28 = smov [#allocation2]  }
   0x8   : > { %p1499_p5 = pnand %p940_p2, %p165_p3  ;;  %s181_s29 = sshll.u32 %s1430_s28, 4  ;;  %s182_s29 = int_to_ptr.vmem [resolvable:$true] %s181_s29 }
   0x9   : > { %s1508_s30 = sadd.s32 1, %s1428_s21   ;;  %s1431_s6 = smov 256  }
   0xa   : > { %p1279_p6 = pneg %p1499_p5  ;;  %s1432_s7 = smov 16  }
   0xb   : > { %s86_s8 = ssub.s32 %s1428_s21, %s1508_s30  ;;  %s89_s9 = sadd.s32 1, %s1424_s20 }
   0xc   : > { %p1280_p7 = pnand %p1279_p6, %p103_p1  ;;  %p87_p8 = scmp.eq.s32.totalorder %s86_s8, 0 }
   0xd   : > { %p96_p9 = scmp.ne.s32.totalorder %s1424_s20, %s1420_s19  ;;  %p97_p10 = scmp.eq.s32.totalorder %s1428_s21, 0 }
   0xe   : > { %1282 = dma.hbm_to_vmem [thread:$0]  (!%p1280_p7), %s180_s26, 4096, %s182_s29, [#allocation3], %s1431_s6, %s1431_s6, %s1432_s7  }
   0xf   : > { %p1288_p11 = scmp.lt.s32.totalorder %s1428_s21, 2  ;;  %p98_p12 = por %p97_p10, %p96_p9 }
  0x10   : > { %s1518_s10 = scalar_select %p87_p8, %s1424_s20, %s89_s9  }
  0x11   : > { %s198_s11 = sand.u32 1, %s1424_s20   ;;  %s1208_s13 = sshll.u32 %s1428_s21, 8 }
  0x12   : > { %s943_s12 = sshll.u32 %s198_s11, 8  ;;  %s207_s16 = scalar_lea.hbm %s1623_s3, %s1208_s13 }
  0x13   : > { %s202_s17 = scalar_lea.vmem [#allocation4], %s943_s12  ;;  %s208_s24 = sshll.u32 %s207_s16, 4  ;;  %s209_s24 = int_to_ptr.hbm [resolvable:$true] %s208_s24 }
  0x14   : > { %s210_s18 = sshll.u32 %s202_s17, 4  ;;  %p1525_p13 = pnand %p1288_p11, %p98_p12  ;;  %s211_s18 = int_to_ptr.vmem [resolvable:$true] %s210_s18 }
  0x15   : > { %s199_s26 = scalar_lea.sflag [#allocation5], %s198_s11  ;;  %s1360_s28 = sshra.s32 %s209_s24, 4  ;;  %s1361_s28 = int_to_ptr.hbm [resolvable:$true] %s1360_s28 }
  0x16   : > { %s1362_s29 = scalar_lea.hbm %s1361_s28, 256  ;;  %p1364_p2 = pneg %p1525_p13 }
  0x17   : > { %p1363_p0 = scmp.ne.s32.totalorder %s1361_s28, %s1362_s29  ;;  %s1367_s7 = scalar_lea.hbm %s1623_s3, 512 }
  0x18   : > { %p1368_p7 = scmp.lt.s32.totalorder %s1361_s28, %s1623_s3  ;;  %p1369_p8 = scmp.lt.s32.totalorder %s1367_s7, %s1362_s29 }
  0x19   : > { %p1365_p3 = pnand %p1364_p2, %p1363_p0 }
  0x1a   : > { %p1370_p9 = por %p1369_p8, %p1368_p7 }
  0x1b   : > { %p1366_p6 = pneg %p1365_p3 }
  0x1d   : > { %p1371_p10 = pnand %p1370_p9, %p1366_p6 }
  0x1f   : > { %1374 = shalt.err (!%p1371_p10)
}
  0x20   : > { %s1433_s11 = smov 64   ;;  %s1434_s12 = smov 4  }
  0x21   : > { %1286 = dma.hbm_to_vmem [thread:$0]  (!%p1525_p13), %s209_s24, 4096, %s211_s18, %s199_s26, %s1433_s11, %s1433_s11, %s1434_s12  }
  0x22   : > { %228 = sbr.rel (%p1499_p5) target bundleno = 361 (0x169), region = 40 }
  0x27   : > { %1407 = dma.done.wait (%p103_p1), [#allocation3], 4096  }
  0x28   : > { %1409 = vsyncadd (%p103_p1), [#allocation3], 4294963200  ;;  %s235_s13 = sand.u32 1, %s1420_s19  }
  0x29   : > { %s948_s14 = sshll.u32 %s235_s13, 8  ;;  %s236_s15 = scalar_lea.sflag [#allocation5], %s235_s13 }
  0x2a   : > { %s1546_s16 = scalar_lea.vmem [#allocation4], %s948_s14 }
  0x2b   : > { %1411 = dma.done.wait (%p1492_p4), %s236_s15, 4096  }
  0x2c   : > { %1413 = vsyncadd (%p1492_p4), %s236_s15, 4294963200  ;;  %v1064_v0 = vld [vmem:[#allocation2 + $0xe0] sm:$0xf]  ;;  %v1239_v1 = vld [vmem:[#allocation2 + $0xec] sm:$0xf0]  ;;  %p269_p1 = scmp.lt.s32.totalorder %s1484_s22, 1 }
  0x2d   : > { %v1072_v2 = vld [vmem:[#allocation2 + $0xe8] sm:$0xf]  ;;  %v1065_v3 = vor.u32 %v1239_v1, %v1064_v0  ;;  %v1240_v4 = vld [vmem:[#allocation2 + $0xf4] sm:$0xf0]  ;;  %v1238_v5 = vld [vmem:[#allocation2 + $0xec] sm:$0xf] }
  0x2e   : > { %v1074_v6 = vld [vmem:[#allocation2 + $0xf8] sm:$0xf0]  ;;  %v1073_v7 = vor.u32 %v1240_v4, %v1072_v2  ;;  %v1237_v9 = vld [vmem:[#allocation2 + $0xe4] sm:$0xf]  ;;  %v1066_v10 = vld [vmem:[#allocation2 + $0xf0] sm:$0xf0] }
  0x2f   : > { %v1077_v8 = vor.u32 %v1238_v5, %v1074_v6  ;;  %v1048_v11 = vld [vmem:[#allocation2 + $0xc0] sm:$0xf]  ;;  %479 = vmatpush.bf16.msra.mxu0 %v1065_v3  ;;  %v1069_v12 = vor.u32 %v1237_v9, %v1066_v10  ;;  %v1235_v13 = vld [vmem:[#allocation2 + $0xcc] sm:$0xf0]  ;;  %v1056_v14 = vld [vmem:[#allocation2 + $0xc8] sm:$0xf] }
  0x30   : > { %v1236_v15 = vld [vmem:[#allocation2 + $0xd4] sm:$0xf0]  ;;  %505 = vmatpush.bf16.msra.mxu2 %v1073_v7  ;;  %v1049_v16 = vor.u32 %v1235_v13, %v1048_v11  ;;  %v1234_v18 = vld [vmem:[#allocation2 + $0xcc] sm:$0xf]  ;;  %v1058_v19 = vld [vmem:[#allocation2 + $0xd8] sm:$0xf0] }
  0x31   : > { %518 = vmatpush.bf16.msra.mxu3 %v1077_v8  ;;  %v1057_v17 = vor.u32 %v1236_v15, %v1056_v14  ;;  %v1233_v20 = vld [vmem:[#allocation2 + $0xc4] sm:$0xf]  ;;  %492 = vmatpush.bf16.msra.mxu1 %v1069_v12  ;;  %v1061_v21 = vor.u32 %v1234_v18, %v1058_v19  ;;  %v1050_v22 = vld [vmem:[#allocation2 + $0xd0] sm:$0xf0]  ;;  %v1032_v23 = vld [vmem:[#allocation2 + $0xa0] sm:$0xf] }
  0x32   : > { %v1231_v24 = vld [vmem:[#allocation2 + $0xac] sm:$0xf0]  ;;  %v1053_v25 = vor.u32 %v1233_v20, %v1050_v22  ;;  %v1040_v26 = vld [vmem:[#allocation2 + $0xa8] sm:$0xf]  ;;  %v1232_v27 = vld [vmem:[#allocation2 + $0xb4] sm:$0xf0] }
  0x33   : > { %v1230_v28 = vld [vmem:[#allocation2 + $0xac] sm:$0xf]  ;;  %480 = vmatpush.bf16.msra.mxu0 %v1049_v16  ;;  %v1033_v29 = vor.u32 %v1231_v24, %v1032_v23  ;;  %v1042_v30 = vld [vmem:[#allocation2 + $0xb8] sm:$0xf0]  ;;  %v1229_v31 = vld [vmem:[#allocation2 + $0xa4] sm:$0xf]  ;;  %v1041_v33 = vor.u32 %v1232_v27, %v1040_v26 }
  0x34   : > { %v1034_v32 = vld [vmem:[#allocation2 + $0xb0] sm:$0xf0]  ;;  %506 = vmatpush.bf16.msra.mxu2 %v1057_v17  ;;  %v1045_v34 = vor.u32 %v1230_v28, %v1042_v30  ;;  %v1016_v35 = vld [vmem:[#allocation2 + $0x80] sm:$0xf]  ;;  %v1227_v36 = vld [vmem:[#allocation2 + $0x8c] sm:$0xf0] }
  0x35   : > { %519 = vmatpush.bf16.msra.mxu3 %v1061_v21  ;;  %v1024_v37 = vld [vmem:[#allocation2 + $0x88] sm:$0xf]  ;;  %493 = vmatpush.bf16.msra.mxu1 %v1053_v25  ;;  %v1037_v38 = vor.u32 %v1229_v31, %v1034_v32  ;;  %v1228_v39 = vld [vmem:[#allocation2 + $0x94] sm:$0xf0]  ;;  %v1226_v40 = vld [vmem:[#allocation2 + $0x8c] sm:$0xf]  ;;  %v1017_v44 = vor.u32 %v1227_v36, %v1016_v35 }
  0x36   : > { %v1026_v41 = vld [vmem:[#allocation2 + $0x98] sm:$0xf0]  ;;  %v1225_v42 = vld [vmem:[#allocation2 + $0x84] sm:$0xf]  ;;  %v1018_v43 = vld [vmem:[#allocation2 + $0x90] sm:$0xf0]  ;;  %v1025_v45 = vor.u32 %v1228_v39, %v1024_v37 }
  0x37   : > { %481 = vmatpush.bf16.msra.mxu0 %v1033_v29  ;;  %v1029_v46 = vor.u32 %v1226_v40, %v1026_v41  ;;  %v1000_v47 = vld [vmem:[#allocation2 + $0x60] sm:$0xf]  ;;  %v1223_v48 = vld [vmem:[#allocation2 + $0x6c] sm:$0xf0]  ;;  %v1008_v49 = vld [vmem:[#allocation2 + $0x68] sm:$0xf]  ;;  %v1021_v50 = vor.u32 %v1225_v42, %v1018_v43 }
  0x38   : > { %507 = vmatpush.bf16.msra.mxu2 %v1041_v33  ;;  %v1224_v51 = vld [vmem:[#allocation2 + $0x74] sm:$0xf0]  ;;  %v1222_v52 = vld [vmem:[#allocation2 + $0x6c] sm:$0xf]  ;;  %v1010_v53 = vld [vmem:[#allocation2 + $0x78] sm:$0xf0]  ;;  %v1001_v56 = vor.u32 %v1223_v48, %v1000_v47 }
  0x39   : > { %520 = vmatpush.bf16.msra.mxu3 %v1045_v34  ;;  %494 = vmatpush.bf16.msra.mxu1 %v1037_v38  ;;  %v1221_v54 = vld [vmem:[#allocation2 + $0x64] sm:$0xf]  ;;  %v1002_v55 = vld [vmem:[#allocation2 + $0x70] sm:$0xf0]  ;;  %v1009_v57 = vor.u32 %v1224_v51, %v1008_v49  ;;  %v1013_v58 = vor.u32 %v1222_v52, %v1010_v53  ;;  %v984_v59 = vld [vmem:[#allocation2 + $0x40] sm:$0xf] }
  0x3a   : > { %v1219_v60 = vld [vmem:[#allocation2 + $0x4c] sm:$0xf0]  ;;  %v992_v61 = vld [vmem:[#allocation2 + $0x48] sm:$0xf]  ;;  %v1005_v62 = vor.u32 %v1221_v54, %v1002_v55  ;;  %v1220_v63 = vld [vmem:[#allocation2 + $0x54] sm:$0xf0] }
  0x3b   : > { %482 = vmatpush.bf16.msra.mxu0 %v1017_v44  ;;  %v1218_v0 = vld [vmem:[#allocation2 + $0x4c] sm:$0xf]  ;;  %v994_v1 = vld [vmem:[#allocation2 + $0x58] sm:$0xf0]  ;;  %v1217_v2 = vld [vmem:[#allocation2 + $0x44] sm:$0xf]  ;;  %v985_v4 = vor.u32 %v1219_v60, %v984_v59  ;;  %v993_v5 = vor.u32 %v1220_v63, %v992_v61 }
  0x3c   : > { %508 = vmatpush.bf16.msra.mxu2 %v1025_v45  ;;  %v986_v3 = vld [vmem:[#allocation2 + $0x50] sm:$0xf0]  ;;  %v997_v6 = vor.u32 %v1218_v0, %v994_v1  ;;  %v968_v7 = vld [vmem:[#allocation2 + $0x20] sm:$0xf]  ;;  %v1215_v8 = vld [vmem:[#allocation2 + $0x2c] sm:$0xf0] }
  0x3d   : > { %521 = vmatpush.bf16.msra.mxu3 %v1029_v46  ;;  %495 = vmatpush.bf16.msra.mxu1 %v1021_v50  ;;  %v976_v9 = vld [vmem:[#allocation2 + $0x28] sm:$0xf]  ;;  %v989_v10 = vor.u32 %v1217_v2, %v986_v3  ;;  %v1216_v11 = vld [vmem:[#allocation2 + $0x34] sm:$0xf0]  ;;  %v1214_v12 = vld [vmem:[#allocation2 + $0x2c] sm:$0xf]  ;;  %v969_v16 = vor.u32 %v1215_v8, %v968_v7 }
  0x3e   : > { %v978_v13 = vld [vmem:[#allocation2 + $0x38] sm:$0xf0]  ;;  %v1213_v14 = vld [vmem:[#allocation2 + $0x24] sm:$0xf]  ;;  %v970_v15 = vld [vmem:[#allocation2 + $0x30] sm:$0xf0]  ;;  %v977_v17 = vor.u32 %v1216_v11, %v976_v9 }
  0x3f   : > { %483 = vmatpush.bf16.msra.mxu0 %v1001_v56  ;;  %v981_v18 = vor.u32 %v1214_v12, %v978_v13  ;;  %v952_v19 = vld [vmem:[#allocation2] sm:$0xf]  ;;  %v1211_v20 = vld [vmem:[#allocation2 + $0xc] sm:$0xf0]  ;;  %v960_v21 = vld [vmem:[#allocation2 + $0x8] sm:$0xf]  ;;  %v973_v22 = vor.u32 %v1213_v14, %v970_v15 }
  0x40   : > { %509 = vmatpush.bf16.msra.mxu2 %v1009_v57  ;;  %v1212_v23 = vld [vmem:[#allocation2 + $0x14] sm:$0xf0]  ;;  %v1210_v24 = vld [vmem:[#allocation2 + $0xc] sm:$0xf]  ;;  %v962_v25 = vld [vmem:[#allocation2 + $0x18] sm:$0xf0]  ;;  %v953_v28 = vor.u32 %v1211_v20, %v952_v19 }
  0x41   : > { %522 = vmatpush.bf16.msra.mxu3 %v1013_v58  ;;  %496 = vmatpush.bf16.msra.mxu1 %v1005_v62  ;;  %v1209_v26 = vld [vmem:[#allocation2 + $0x4] sm:$0xf]  ;;  %v954_v27 = vld [vmem:[#allocation2 + $0x10] sm:$0xf0]  ;;  %v961_v29 = vor.u32 %v1212_v23, %v960_v21  ;;  %v965_v30 = vor.u32 %v1210_v24, %v962_v25  ;;  %v1248_v32 = vld [vmem:[%s1546_s16 + $0x38] sm:$0xff]  ;;  %s1634_s22 = smov (!%p269_p1, %s1484_s22), 1 }
  0x42   : > { %v957_v31 = vor.u32 %v1209_v26, %v954_v27  ;;  %v1256_v33 = vld [vmem:[%s1546_s16 + $0x78] sm:$0xff]  ;;  %v276_v34 = vld [vmem:[%s1620_s0] sm:$0xf]  ;;  %v1247_v36 = vld [vmem:[%s1546_s16 + $0x30] sm:$0xff]  ;;  %s271_s24 = scalar_lea.vmem %s1624_s4, %s1634_s22  ;;  %s949_s21 = sshll.u32 %s1634_s22, 3 }
  0x43   : > { %484 = vmatpush.bf16.msra.mxu0 %v985_v4  ;;  %v1264_v35 = vld [vmem:[%s1546_s16 + $0xb8] sm:$0xff]  ;;  %v1255_v38 = vld [vmem:[%s1546_s16 + $0x70] sm:$0xff]  ;;  %v1246_v40 = vld [vmem:[%s1546_s16 + $0x28] sm:$0xff]  ;;  %s275_s8 = scalar_lea.vmem %s1625_s5, %s949_s21 }
  0x44   : > { %510 = vmatpush.bf16.msra.mxu2 %v993_v5  ;;  %v1272_v37 = vld [vmem:[%s1546_s16 + $0xf8] sm:$0xff]  ;;  %v1263_v39 = vld [vmem:[%s1546_s16 + $0xb0] sm:$0xff]  ;;  %v1254_v42 = vld [vmem:[%s1546_s16 + $0x68] sm:$0xff] }
  0x45   : > { %523 = vmatpush.bf16.msra.mxu3 %v997_v6  ;;  %497 = vmatpush.bf16.msra.mxu1 %v989_v10  ;;  %v1271_v41 = vld [vmem:[%s1546_s16 + $0xf0] sm:$0xff]  ;;  %v1262_v43 = vld [vmem:[%s1546_s16 + $0xa8] sm:$0xff]  ;;  %v1245_v44 = vld [vmem:[%s1546_s16 + $0x20] sm:$0xff] }
  0x46   : > { %v1270_v45 = vld [vmem:[%s1546_s16 + $0xe8] sm:$0xff]  ;;  %v1253_v46 = vld [vmem:[%s1546_s16 + $0x60] sm:$0xff]  ;;  %v1244_v48 = vld [vmem:[%s1546_s16 + $0x18] sm:$0xff] }
  0x47   : > { %485 = vmatpush.bf16.msra.mxu0 %v969_v16  ;;  %v1261_v47 = vld [vmem:[%s1546_s16 + $0xa0] sm:$0xff]  ;;  %v1252_v50 = vld [vmem:[%s1546_s16 + $0x58] sm:$0xff]  ;;  %v1243_v52 = vld [vmem:[%s1546_s16 + $0x10] sm:$0xff] }
  0x48   : > { %511 = vmatpush.bf16.msra.mxu2 %v977_v17  ;;  %v1269_v49 = vld [vmem:[%s1546_s16 + $0xe0] sm:$0xff]  ;;  %v1260_v51 = vld [vmem:[%s1546_s16 + $0x98] sm:$0xff]  ;;  %v1251_v54 = vld [vmem:[%s1546_s16 + $0x50] sm:$0xff] }
  0x49   : > { %524 = vmatpush.bf16.msra.mxu3 %v981_v18  ;;  %498 = vmatpush.bf16.msra.mxu1 %v973_v22  ;;  %v1268_v53 = vld [vmem:[%s1546_s16 + $0xd8] sm:$0xff]  ;;  %v1242_v55 = vld [vmem:[%s1546_s16 + $0x8] sm:$0xff]  ;;  %v1259_v57 = vld [vmem:[%s1546_s16 + $0x90] sm:$0xff] }
  0x4a   : > { %v1250_v56 = vld [vmem:[%s1546_s16 + $0x48] sm:$0xff]  ;;  %v1267_v58 = vld [vmem:[%s1546_s16 + $0xd0] sm:$0xff]  ;;  %v1241_v59 = vld [vmem:[%s1546_s16] sm:$0xff] }
  0x4b   : > { %486 = vmatpush.bf16.msra.mxu0 %v953_v28  ;;  %v1249_v60 = vld [vmem:[%s1546_s16 + $0x40] sm:$0xff]  ;;  %v1258_v61 = vld [vmem:[%s1546_s16 + $0x88] sm:$0xff] }
  0x4c   : > { %512 = vmatpush.bf16.msra.mxu2 %v961_v29  ;;  %v1266_v62 = vld [vmem:[%s1546_s16 + $0xc8] sm:$0xff]  ;;  %v1257_v63 = vld [vmem:[%s1546_s16 + $0x80] sm:$0xff] }
  0x4d   : > { %525 = vmatpush.bf16.msra.mxu3 %v965_v30  ;;  %499 = vmatpush.bf16.msra.mxu1 %v957_v31  ;;  %v1265_v0 = vld [vmem:[%s1546_s16 + $0xc0] sm:$0xff] }
  0x4e   : > { %487 = vmatmul.bf16.vlgmr.msra.gmra.mxu0 %v276_v34  ;;  %v309_v1 = vld [vmem:[%s1622_s2] sm:$0xf] }
  0x4f   : > { %799 = vmatpush.bf16.msrb.mxu0 %v1248_v32  ;;  %513 = vmatmul.bf16.vlgmr.msra.gmra.mxu2 %v276_v34  ;;  %v311_v2 = vperm.slane %v309_v1, 0  ;;  %v312_v3 = vperm.slane %v309_v1, 1  ;;  %v313_v9 = vperm.slane %v309_v1, 2  ;;  %v314_v10 = vperm.slane %v309_v1, 3  ;;  %v1327_v27 = vld [vmem:[%s271_s24] ss:$0 sm:$0xff] }
  0x50   : > { %526 = vmatmul.bf16.vlgmr.msra.gmra.mxu3 %v276_v34  ;;  %500 = vmatmul.bf16.vlgmr.msra.gmra.mxu1 %v276_v34 }
  0x51   : > { %812 = vmatpush.bf16.msrb.mxu1 %v1256_v33  ;;  %825 = vmatpush.bf16.msrb.mxu2 %v1264_v35 }
  0x52   : > { %838 = vmatpush.bf16.msrb.mxu3 %v1272_v37 }
  0x53   : > { %800 = vmatpush.bf16.msrb.mxu0 %v1247_v36 }
  0x55   : > { %813 = vmatpush.bf16.msrb.mxu1 %v1255_v38  ;;  %826 = vmatpush.bf16.msrb.mxu2 %v1263_v39 }
  0x56   : > { %839 = vmatpush.bf16.msrb.mxu3 %v1271_v41 }
  0x57   : > { %801 = vmatpush.bf16.msrb.mxu0 %v1246_v40 }
  0x59   : > { %814 = vmatpush.bf16.msrb.mxu1 %v1254_v42  ;;  %827 = vmatpush.bf16.msrb.mxu2 %v1262_v43 }
  0x5a   : > { %840 = vmatpush.bf16.msrb.mxu3 %v1270_v45 }
  0x5b   : > { %802 = vmatpush.bf16.msrb.mxu0 %v1245_v44 }
  0x5d   : > { %815 = vmatpush.bf16.msrb.mxu1 %v1253_v46  ;;  %828 = vmatpush.bf16.msrb.mxu2 %v1261_v47 }
  0x5e   : > { %841 = vmatpush.bf16.msrb.mxu3 %v1269_v49 }
  0x5f   : > { %803 = vmatpush.bf16.msrb.mxu0 %v1244_v48 }
  0x61   : > { %816 = vmatpush.bf16.msrb.mxu1 %v1252_v50  ;;  %829 = vmatpush.bf16.msrb.mxu2 %v1260_v51 }
  0x62   : > { %842 = vmatpush.bf16.msrb.mxu3 %v1268_v53 }
  0x63   : > { %804 = vmatpush.bf16.msrb.mxu0 %v1243_v52 }
  0x65   : > { %817 = vmatpush.bf16.msrb.mxu1 %v1251_v54  ;;  %830 = vmatpush.bf16.msrb.mxu2 %v1259_v57 }
  0x66   : > { %843 = vmatpush.bf16.msrb.mxu3 %v1267_v58 }
  0x67   : > { %805 = vmatpush.bf16.msrb.mxu0 %v1242_v55 }
  0x69   : > { %818 = vmatpush.bf16.msrb.mxu1 %v1250_v56  ;;  %831 = vmatpush.bf16.msrb.mxu2 %v1258_v61 }
  0x6a   : > { %844 = vmatpush.bf16.msrb.mxu3 %v1266_v62 }
  0x6b   : > { %806 = vmatpush.bf16.msrb.mxu0 %v1241_v59 }
  0x6d   : > { %819 = vmatpush.bf16.msrb.mxu1 %v1249_v60  ;;  %832 = vmatpush.bf16.msrb.mxu2 %v1257_v63 }
  0x6e   : > { %845 = vmatpush.bf16.msrb.mxu3 %v1265_v0 }
  0xcb   : > { %v488_v4 = vpop.f32.mrf.mxu0 }
  0xcc   : > { %v489_v5 = vadd.f32 %v488_v4, %v311_v2 }
  0xcd   : > { %v501_v6 = vpop.f32.mrf.mxu1 }
  0xce   : > { %v531_v7 = vmax.f32 %v489_v5, 0.0  ;;  %v502_v8 = vadd.f32 %v501_v6, %v312_v3 }
  0xd0   : > { %v535_v11 = vpack.c.bf16 %v531_v7, %v531_v7  ;;  %v532_v12 = vmax.f32 %v502_v8, 0.0 }
  0xd2   : > { %v536_v13 = vpack.c.bf16 %v532_v12, %v532_v12  ;;  %v514_v14 = vpop.f32.mrf.mxu2  ;;  %807 = vmatmul.bf16.vlgmr.msrb.gmra.mxu0 %v535_v11 }
  0xd3   : > { %v527_v15 = vpop.f32.mrf.mxu3  ;;  %v515_v16 = vadd.f32 %v514_v14, %v313_v9  ;;  %v490_v18 = vpop.f32.mrf.mxu0 }
  0xd4   : > { %v528_v17 = vadd.f32 %v527_v15, %v314_v10  ;;  %820 = vmatmul.bf16.vlgmr.msrb.gmra.mxu1 %v536_v13 }
  0xd5   : > { %v533_v19 = vmax.f32 %v515_v16, 0.0  ;;  %v503_v21 = vpop.f32.mrf.mxu1 }
  0xd6   : > { %v534_v20 = vmax.f32 %v528_v17, 0.0 }
  0xd7   : > { %v537_v22 = vpack.c.bf16 %v533_v19, %v533_v19 }
  0xd8   : > { %v538_v23 = vpack.c.bf16 %v534_v20, %v534_v20 }
  0xd9   : > { %833 = vmatmul.bf16.vlgmr.msrb.gmra.mxu2 %v537_v22 }
  0xda   : > { %846 = vmatmul.bf16.vlgmr.msrb.gmra.mxu3 %v538_v23  ;;  %v516_v24 = vpop.f32.mrf.mxu2 }
  0xdb   : > { %v529_v25 = vpop.f32.mrf.mxu3 }
 0x14f   : > { %v808_v26 = vpop.f32.mrf.mxu0 }
 0x150   : > { %v809_v29 = vadd.f32 %v1327_v27, %v808_v26 }
 0x151   : > { %v821_v28 = vpop.f32.mrf.mxu1 }
 0x152   : > { %v822_v31 = vadd.f32 %v821_v28, %v809_v29 }
 0x157   : > { %v810_v30 = vpop.f32.mrf.mxu0 }
 0x159   : > { %v823_v32 = vpop.f32.mrf.mxu1 }
 0x15c   : > { %v834_v33 = vpop.f32.mrf.mxu2 }
 0x15d   : > { %v847_v34 = vpop.f32.mrf.mxu3  ;;  %v835_v35 = vadd.f32 %v834_v33, %v822_v31 }
 0x15f   : > { %v848_v36 = vadd.f32 %v847_v34, %v835_v35 }
 0x161   : > { %1328 = vtanh.f32 %v848_v36 }
 0x164   : > { %v836_v37 = vpop.f32.mrf.mxu2 }
 0x165   : > { %v849_v38 = vpop.f32.mrf.mxu3 }
 0x167   : > { %v1329_v39 = vpop.eup %1328 }
 0x168   : > { %852 = vst [vmem:[%s275_s8] sm:$0xff] %v1329_v39 }
 0x169 PF: > { %p16_p4 = scmp.ge.s32.totalorder %s1508_s30, 4   ;;  %s1629_s18 = smov %s1420_s19 }
 0x16a   : > { %s1630_s19 = smov %s1424_s20  ;;  %s1631_s20 = smov %s1518_s10 }
 0x16b   : > { %s1632_s21 = smov %s1508_s30  ;;  %18 = sbr.rel (!%p16_p4) target bundleno = 4 (0x4), region = 88 }
 0x170   :  { %872 = vsyncpa [#allocation3], 1 }
 0x171   :  { %874 = vsyncpa [#allocation3 + $0x1], 1 }
 0x172   :  { %875 = vsyncpa [#allocation5], 1 }
 0x173   :  { %877 = vsyncpa [#allocation5 + $0x1], 1 }

</bundles_post_ra>
